<compile_context>
chip_gen: v6e
topology: v6e:2x2x1
jax: 0.10.0
libtpu: 0.0.40
codegen_flags: <defaults>
</compile_context>

<pallas_src>
import functools

import jax
import jax.numpy as jnp
from jax import lax
from jax.experimental import pallas as pl
from jax.experimental.pallas import tpu as pltpu


def _lstm_kernel(x_ref, w_ih_ref, w_hh_ref, b_ref, h0_ref, c0_ref,
                 out_ref, h_sc, c_sc, xw_ref, *, hidden: int, chunk: int):
    """One time-chunk of the LSTM recurrence.

    x_ref    : (CHUNK, Din) f32   input rows for this chunk
    w_ih_ref : (Din, 4H)    bf16  input->gate weights (i/f/o columns pre-scaled by 0.5)
    w_hh_ref : (H, 4H)      f32   hidden->gate weights (i/f/o columns pre-scaled by 0.5)
    b_ref    : (1, 4H)      f32   combined bias (b_ih + b_hh, i/f/o pre-scaled by 0.5)
    h0_ref   : (1, H)       f32   initial hidden state
    c0_ref   : (1, H)       f32   initial cell state
    out_ref  : (CHUNK, H)   f32   hidden state for every timestep of the chunk
    h_sc,c_sc: (1, H)       f32   persistent carry across grid steps
    xw_ref   : (CHUNK, 4H)  f32   scratch: batched input projection for the chunk
    """
    H = hidden

    @pl.when(pl.program_id(0) == 0)
    def _():
        h_sc[...] = h0_ref[...].astype(jnp.float32)
        c_sc[...] = c0_ref[...].astype(jnp.float32)

    # (1) Batched input projection for the whole chunk: bf16 MXU path, f32 acc.
    x_bf = x_ref[...].astype(jnp.bfloat16)
    xw_ref[...] = (
        jnp.dot(x_bf, w_ih_ref[...], preferred_element_type=jnp.float32)
        + b_ref[...]
    )

    w_hh = w_hh_ref[...]            # (H, 4H) f32, resident across the loop
    h = h_sc[...]
    c = c_sc[...]

    n_sub = chunk // 8              # static

    def sub_block(s, carry):
        h, c = carry
        base = pl.multiple_of(s * 8, 8)
        xw8 = xw_ref[pl.ds(base, 8), :]            # one aligned (8, 4H) load
        rows = []
        for t in range(8):                         # fully unrolled micro-loop
            gates = xw8[t:t + 1, :] + jnp.dot(
                h, w_hh, preferred_element_type=jnp.float32)   # (1, 4H)
            # One EUP tanh over the full 4H-lane vreg; sigmoid recovered on the
            # VPU: sigmoid(z) = 0.5*tanh(z/2) + 0.5 (0.5 folded into weights).
            tg = jnp.tanh(gates)
            i = 0.5 * tg[:, 0 * H:1 * H] + 0.5
            f = 0.5 * tg[:, 1 * H:2 * H] + 0.5
            g = tg[:, 2 * H:3 * H]
            o = 0.5 * tg[:, 3 * H:4 * H] + 0.5
            c = f * c + i * g
            h = o * jnp.tanh(c)                    # second (and last) EUP push
            rows.append(h)
        # One unmasked full-sublane-block store per 8 timesteps.
        out_ref[pl.ds(base, 8), :] = jnp.concatenate(
            rows, axis=0).astype(out_ref.dtype)
        return (h, c)

    h, c = lax.fori_loop(0, n_sub, sub_block, (h, c), unroll=True)

    # Carry (h, c) to the next time chunk.
    h_sc[...] = h
    c_sc[...] = c


def prepare_lstm_params(w_ih, w_hh, b_ih, b_hh, h0, c0):
    """One-time parameter re-layout (do at param-prep time, not per forward).

    w_ih : (4H, Din), w_hh : (4H, H), b_ih/b_hh : (4H,), h0/c0 : (1, H)
    PyTorch nn.LSTMCell layout, gate order (i, f, g, o).
    """
    H = h0.shape[-1]
    w_ih_t = jnp.asarray(w_ih, jnp.float32).T            # (Din, 4H)
    w_hh_t = jnp.asarray(w_hh, jnp.float32).T            # (H, 4H)
    bias = (jnp.asarray(b_ih, jnp.float32)
            + jnp.asarray(b_hh, jnp.float32)).reshape(1, -1)   # (1, 4H)

    # Fold the 0.5 pre-scale (sigmoid via tanh) into the i/f/o gate columns;
    # leave the g (tanh) column unscaled.  Power-of-two scale => exact.
    scale = jnp.concatenate([
        jnp.full((H,), 0.5, jnp.float32),   # i
        jnp.full((H,), 0.5, jnp.float32),   # f
        jnp.ones((H,), jnp.float32),        # g
        jnp.full((H,), 0.5, jnp.float32),   # o
    ]).reshape(1, -1)

    return {
        # bf16 feeds the MXU for the batched input projection.
        "w_ih": (w_ih_t * scale).astype(jnp.bfloat16),
        # Keep the recurrent path f32: rounding compounds over the sequence.
        "w_hh": (w_hh_t * scale).astype(jnp.float32),
        "bias": (bias * scale).astype(jnp.float32),
        "h0": jnp.asarray(h0, jnp.float32),
        "c0": jnp.asarray(c0, jnp.float32),
    }


def simple_lstm_forward(params, xs, *, chunk: int = 8):
    """ys[t] = h_t of the LSTM recurrence.  xs: (N, Din) -> ys: (N, H)."""
    assert chunk % 8 == 0, "time chunk must be a multiple of 8 sublanes"
    n, din = xs.shape
    H = params["h0"].shape[-1]

    n_pad = pl.cdiv(n, chunk) * chunk
    x = xs.astype(jnp.float32)
    if n_pad != n:
        x = jnp.pad(x, ((0, n_pad - n), (0, 0)))

    kernel = functools.partial(_lstm_kernel, hidden=H, chunk=chunk)

    # NOTE: for long sequences, size `chunk` for VMEM (v7x: 64 MiB/TC, 32 MiB
    # scoped default) and set vmem_limit_bytes explicitly; here the working
    # set is a few KiB so defaults are fine.
    ys = pl.pallas_call(
        kernel,
        out_shape=jax.ShapeDtypeStruct((n_pad, H), jnp.float32),
        grid_spec=pltpu.PrefetchScalarGridSpec(
            num_scalar_prefetch=0,
            grid=(n_pad // chunk,),
            in_specs=[
                pl.BlockSpec((chunk, din), lambda t: (t, 0)),      # x chunk
                pl.BlockSpec((din, 4 * H), lambda t: (0, 0)),      # W_ih^T
                pl.BlockSpec((H, 4 * H), lambda t: (0, 0)),        # W_hh^T
                pl.BlockSpec((1, 4 * H), lambda t: (0, 0)),        # bias
                pl.BlockSpec((1, H), lambda t: (0, 0)),            # h0
                pl.BlockSpec((1, H), lambda t: (0, 0)),            # c0
            ],
            out_specs=pl.BlockSpec((chunk, H), lambda t: (t, 0)),
            scratch_shapes=[
                pltpu.VMEM((1, H), jnp.float32),          # h carry
                pltpu.VMEM((1, H), jnp.float32),          # c carry
                pltpu.VMEM((chunk, 4 * H), jnp.float32),  # xw projection
            ],
        ),
        compiler_params=pltpu.CompilerParams(
            dimension_semantics=("arbitrary",),   # sequential time recurrence
        ),
    )(x, params["w_ih"], params["w_hh"], params["bias"],
      params["h0"], params["c0"])

    return ys[:n]


if __name__ == "__main__":
    key = jax.random.PRNGKey(0)
    N, DIN, H = 8, 16, 32          # seq length 8, input size 16, output size 32

    ks = jax.random.split(key, 7)
    xs = jax.random.normal(ks[0], (N, DIN), jnp.float32)
    # Parameters in PyTorch nn.LSTMCell layout (gate order i, f, g, o).
    w_ih = jax.random.normal(ks[1], (4 * H, DIN), jnp.float32) * 0.2
    w_hh = jax.random.normal(ks[2], (4 * H, H), jnp.float32) * 0.2
    b_ih = jax.random.normal(ks[3], (4 * H,), jnp.float32) * 0.1
    b_hh = jax.random.normal(ks[4], (4 * H,), jnp.float32) * 0.1
    h0 = jax.random.normal(ks[5], (1, H), jnp.float32)
    c0 = jax.random.normal(ks[6], (1, H), jnp.float32)

    params = prepare_lstm_params(w_ih, w_hh, b_ih, b_hh, h0, c0)
    ys = jax.block_until_ready(simple_lstm_forward(params, xs, chunk=8))
    assert ys.shape == (N, H)
    assert bool(jnp.isfinite(ys).all())

    # Pure-JAX reference mirroring torch.nn.LSTMCell math.
    def ref(xs_in, w_ih_in):
        h, c = h0, c0
        outs = []
        for t in range(xs_in.shape[0]):
            x = xs_in[t:t + 1]
            gates = x @ w_ih_in.T + b_ih + h @ w_hh.T + b_hh
            i = jax.nn.sigmoid(gates[:, 0 * H:1 * H])
            f = jax.nn.sigmoid(gates[:, 1 * H:2 * H])
            g = jnp.tanh(gates[:, 2 * H:3 * H])
            o = jax.nn.sigmoid(gates[:, 3 * H:4 * H])
            c = f * c + i * g
            h = o * jnp.tanh(c)
            outs.append(h[0])
        return jnp.stack(outs)

    # (a) Matched-precision reference: same bf16 rounding of x / W_ih that the
    #     MXU sees -> kernel should agree tightly (checks the algorithm).
    ys_matched = ref(xs.astype(jnp.bfloat16).astype(jnp.float32),
                     w_ih.astype(jnp.bfloat16).astype(jnp.float32))
    err_matched = float(jnp.max(jnp.abs(ys - ys_matched)))
    assert jnp.allclose(ys, ys_matched, atol=2e-3, rtol=2e-3), err_matched

    # (b) Full-f32 reference: looser tolerance accounts for the bf16 input
    #     projection compounding through the recurrence.
    ys_f32 = ref(xs, w_ih)
    err_f32 = float(jnp.max(jnp.abs(ys - ys_f32)))
    assert jnp.allclose(ys, ys_f32, atol=5e-2, rtol=5e-2), err_f32

    print("KERNEL_OK")
</pallas_src>

<mosaic_0001>
module attributes {stable_mosaic.version = 11 : i64} {
  func.func @_lstm_kernel(%arg0: i32, %arg1: memref<8x16xf32, #tpu.memory_space<vmem>>, %arg2: memref<16x128xbf16, #tpu.memory_space<vmem>>, %arg3: memref<32x128xf32, #tpu.memory_space<vmem>>, %arg4: memref<1x128xf32, #tpu.memory_space<vmem>>, %arg5: memref<1x32xf32, #tpu.memory_space<vmem>>, %arg6: memref<1x32xf32, #tpu.memory_space<vmem>>, %arg7: memref<8x32xf32, #tpu.memory_space<vmem>>, %arg8: memref<1x32xf32, #tpu.memory_space<vmem>>, %arg9: memref<1x32xf32, #tpu.memory_space<vmem>>, %arg10: memref<8x128xf32, #tpu.memory_space<vmem>>) attributes {dimension_semantics = [#tpu.dimension_semantics<arbitrary>], iteration_bounds = array<i64: 1>, scalar_prefetch = 0 : i64, scratch_operands = 3 : i64, tpu.core_type = #tpu.core_type<tc>, window_params = [{transform_indices = @transform_0, window_bounds = array<i64: 8, 16>}, {pipeline_mode = #tpu.pipeline_mode<synchronous>, transform_indices = @transform_1, window_bounds = array<i64: 16, 128>}, {pipeline_mode = #tpu.pipeline_mode<synchronous>, transform_indices = @transform_2, window_bounds = array<i64: 32, 128>}, {pipeline_mode = #tpu.pipeline_mode<synchronous>, transform_indices = @transform_3, window_bounds = array<i64: 1, 128>}, {pipeline_mode = #tpu.pipeline_mode<synchronous>, transform_indices = @transform_4, window_bounds = array<i64: 1, 32>}, {pipeline_mode = #tpu.pipeline_mode<synchronous>, transform_indices = @transform_5, window_bounds = array<i64: 1, 32>}, {transform_indices = @transform_6, window_bounds = array<i64: 8, 32>}]} {
    %c0_i32 = arith.constant 0 : i32
    %0 = arith.cmpi eq, %arg0, %c0_i32 : i32
    %1 = arith.extui %0 : i1 to i32
    %c0_i32_0 = arith.constant 0 : i32
    %2 = arith.cmpi ne, %1, %c0_i32_0 : i32
    scf.if %2 {
      %c0_77 = arith.constant 0 : index
      %c0_78 = arith.constant 0 : index
      %223 = vector.load %arg5[%c0_77, %c0_78] : memref<1x32xf32, #tpu.memory_space<vmem>>, vector<1x32xf32>
      %c0_79 = arith.constant 0 : index
      %c0_80 = arith.constant 0 : index
      %224 = vector.load %arg8[%c0_79, %c0_80] : memref<1x32xf32, #tpu.memory_space<vmem>>, vector<1x32xf32>
      tpu.vector_store %arg8[%c0_79, %c0_80], %223 {strides = array<i32>} : memref<1x32xf32, #tpu.memory_space<vmem>>, vector<1x32xf32>,
      %c0_81 = arith.constant 0 : index
      %c0_82 = arith.constant 0 : index
      %225 = vector.load %arg6[%c0_81, %c0_82] : memref<1x32xf32, #tpu.memory_space<vmem>>, vector<1x32xf32>
      %c0_83 = arith.constant 0 : index
      %c0_84 = arith.constant 0 : index
      %226 = vector.load %arg9[%c0_83, %c0_84] : memref<1x32xf32, #tpu.memory_space<vmem>>, vector<1x32xf32>
      tpu.vector_store %arg9[%c0_83, %c0_84], %225 {strides = array<i32>} : memref<1x32xf32, #tpu.memory_space<vmem>>, vector<1x32xf32>,
    } else {
    }
    %c0 = arith.constant 0 : index
    %c0_1 = arith.constant 0 : index
    %3 = vector.load %arg1[%c0, %c0_1] : memref<8x16xf32, #tpu.memory_space<vmem>>, vector<8x16xf32>
    %4 = arith.truncf %3 : vector<8x16xf32> to vector<8x16xbf16>
    %c0_2 = arith.constant 0 : index
    %c0_3 = arith.constant 0 : index
    %5 = vector.load %arg2[%c0_2, %c0_3] : memref<16x128xbf16, #tpu.memory_space<vmem>>, vector<16x128xbf16>
    %cst = arith.constant dense<0.000000e+00> : vector<8x128xf32>
    %6 = tpu.matmul %4, %5, %cst {dimension_numbers = #tpu.dot_dimension_numbers<[1], [0], [0], [1], [0, 0, 1, 1], [], []>} : vector<8x16xbf16>, vector<16x128xbf16>, vector<8x128xf32> -> vector<8x128xf32>
    %c0_4 = arith.constant 0 : index
    %c0_5 = arith.constant 0 : index
    %7 = vector.load %arg4[%c0_4, %c0_5] : memref<1x128xf32, #tpu.memory_space<vmem>>, vector<1x128xf32>
    %8 = vector.broadcast %7 : vector<1x128xf32> to vector<8x128xf32>
    %9 = arith.addf %6, %8 : vector<8x128xf32>
    %c0_6 = arith.constant 0 : index
    %c0_7 = arith.constant 0 : index
    %10 = vector.load %arg10[%c0_6, %c0_7] : memref<8x128xf32, #tpu.memory_space<vmem>>, vector<8x128xf32>
    tpu.vector_store %arg10[%c0_6, %c0_7], %9 {strides = array<i32>} : memref<8x128xf32, #tpu.memory_space<vmem>>, vector<8x128xf32>,
    %c0_8 = arith.constant 0 : index
    %c0_9 = arith.constant 0 : index
    %11 = vector.load %arg3[%c0_8, %c0_9] : memref<32x128xf32, #tpu.memory_space<vmem>>, vector<32x128xf32>
    %c0_10 = arith.constant 0 : index
    %c0_11 = arith.constant 0 : index
    %12 = vector.load %arg8[%c0_10, %c0_11] : memref<1x32xf32, #tpu.memory_space<vmem>>, vector<1x32xf32>
    %c0_12 = arith.constant 0 : index
    %c0_13 = arith.constant 0 : index
    %13 = vector.load %arg9[%c0_12, %c0_13] : memref<1x32xf32, #tpu.memory_space<vmem>>, vector<1x32xf32>
    %c0_i32_14 = arith.constant 0 : i32
    %c8_i32 = arith.constant 8 : i32
    %14 = arith.muli %c0_i32_14, %c8_i32 : i32
    %15 = tpu.assume_multiple %14, 8 : i32
    %16 = arith.index_cast %15 : i32 to index
    %c0_15 = arith.constant 0 : index
    %17 = vector.load %arg10[%16, %c0_15] : memref<8x128xf32, #tpu.memory_space<vmem>>, vector<8x128xf32>
    %18 = vector.extract_strided_slice %17 {offsets = [0, 0], sizes = [1, 128], strides = [1, 1]} : vector<8x128xf32> to vector<1x128xf32>
    %cst_16 = arith.constant dense<0.000000e+00> : vector<1x128xf32>
    %19 = tpu.matmul %12, %11, %cst_16 {dimension_numbers = #tpu.dot_dimension_numbers<[1], [0], [0], [1], [0, 0, 1, 1], [], []>} : vector<1x32xf32>, vector<32x128xf32>, vector<1x128xf32> -> vector<1x128xf32>
    %20 = arith.addf %18, %19 : vector<1x128xf32>
    %21 = math.tanh %20 : vector<1x128xf32>
    %22 = vector.extract_strided_slice %21 {offsets = [0, 0], sizes = [1, 32], strides = [1, 1]} : vector<1x128xf32> to vector<1x32xf32>
    %cst_17 = arith.constant 5.000000e-01 : f32
    %23 = vector.broadcast %cst_17 : f32 to vector<1x32xf32>
    %24 = arith.mulf %23, %22 : vector<1x32xf32>
    %cst_18 = arith.constant 5.000000e-01 : f32
    %25 = vector.broadcast %cst_18 : f32 to vector<1x32xf32>
    %26 = arith.addf %24, %25 : vector<1x32xf32>
    %27 = vector.extract_strided_slice %21 {offsets = [0, 32], sizes = [1, 32], strides = [1, 1]} : vector<1x128xf32> to vector<1x32xf32>
    %cst_19 = arith.constant 5.000000e-01 : f32
    %28 = vector.broadcast %cst_19 : f32 to vector<1x32xf32>
    %29 = arith.mulf %28, %27 : vector<1x32xf32>
    %cst_20 = arith.constant 5.000000e-01 : f32
    %30 = vector.broadcast %cst_20 : f32 to vector<1x32xf32>
    %31 = arith.addf %29, %30 : vector<1x32xf32>
    %32 = vector.extract_strided_slice %21 {offsets = [0, 64], sizes = [1, 32], strides = [1, 1]} : vector<1x128xf32> to vector<1x32xf32>
    %33 = vector.extract_strided_slice %21 {offsets = [0, 96], sizes = [1, 32], strides = [1, 1]} : vector<1x128xf32> to vector<1x32xf32>
    %cst_21 = arith.constant 5.000000e-01 : f32
    %34 = vector.broadcast %cst_21 : f32 to vector<1x32xf32>
    %35 = arith.mulf %34, %33 : vector<1x32xf32>
    %cst_22 = arith.constant 5.000000e-01 : f32
    %36 = vector.broadcast %cst_22 : f32 to vector<1x32xf32>
    %37 = arith.addf %35, %36 : vector<1x32xf32>
    %38 = arith.mulf %31, %13 : vector<1x32xf32>
    %39 = arith.mulf %26, %32 : vector<1x32xf32>
    %40 = arith.addf %38, %39 : vector<1x32xf32>
    %41 = math.tanh %40 : vector<1x32xf32>
    %42 = arith.mulf %37, %41 : vector<1x32xf32>
    %43 = vector.extract_strided_slice %17 {offsets = [1, 0], sizes = [1, 128], strides = [1, 1]} : vector<8x128xf32> to vector<1x128xf32>
    %cst_23 = arith.constant dense<0.000000e+00> : vector<1x128xf32>
    %44 = tpu.matmul %42, %11, %cst_23 {dimension_numbers = #tpu.dot_dimension_numbers<[1], [0], [0], [1], [0, 0, 1, 1], [], []>} : vector<1x32xf32>, vector<32x128xf32>, vector<1x128xf32> -> vector<1x128xf32>
    %45 = arith.addf %43, %44 : vector<1x128xf32>
    %46 = math.tanh %45 : vector<1x128xf32>
    %47 = vector.extract_strided_slice %46 {offsets = [0, 0], sizes = [1, 32], strides = [1, 1]} : vector<1x128xf32> to vector<1x32xf32>
    %cst_24 = arith.constant 5.000000e-01 : f32
    %48 = vector.broadcast %cst_24 : f32 to vector<1x32xf32>
    %49 = arith.mulf %48, %47 : vector<1x32xf32>
    %cst_25 = arith.constant 5.000000e-01 : f32
    %50 = vector.broadcast %cst_25 : f32 to vector<1x32xf32>
    %51 = arith.addf %49, %50 : vector<1x32xf32>
    %52 = vector.extract_strided_slice %46 {offsets = [0, 32], sizes = [1, 32], strides = [1, 1]} : vector<1x128xf32> to vector<1x32xf32>
    %cst_26 = arith.constant 5.000000e-01 : f32
    %53 = vector.broadcast %cst_26 : f32 to vector<1x32xf32>
    %54 = arith.mulf %53, %52 : vector<1x32xf32>
    %cst_27 = arith.constant 5.000000e-01 : f32
    %55 = vector.broadcast %cst_27 : f32 to vector<1x32xf32>
    %56 = arith.addf %54, %55 : vector<1x32xf32>
    %57 = vector.extract_strided_slice %46 {offsets = [0, 64], sizes = [1, 32], strides = [1, 1]} : vector<1x128xf32> to vector<1x32xf32>
    %58 = vector.extract_strided_slice %46 {offsets = [0, 96], sizes = [1, 32], strides = [1, 1]} : vector<1x128xf32> to vector<1x32xf32>
    %cst_28 = arith.constant 5.000000e-01 : f32
    %59 = vector.broadcast %cst_28 : f32 to vector<1x32xf32>
    %60 = arith.mulf %59, %58 : vector<1x32xf32>
    %cst_29 = arith.constant 5.000000e-01 : f32
    %61 = vector.broadcast %cst_29 : f32 to vector<1x32xf32>
    %62 = arith.addf %60, %61 : vector<1x32xf32>
    %63 = arith.mulf %56, %40 : vector<1x32xf32>
    %64 = arith.mulf %51, %57 : vector<1x32xf32>
    %65 = arith.addf %63, %64 : vector<1x32xf32>
    %66 = math.tanh %65 : vector<1x32xf32>
    %67 = arith.mulf %62, %66 : vector<1x32xf32>
    %68 = vector.extract_strided_slice %17 {offsets = [2, 0], sizes = [1, 128], strides = [1, 1]} : vector<8x128xf32> to vector<1x128xf32>
    %cst_30 = arith.constant dense<0.000000e+00> : vector<1x128xf32>
    %69 = tpu.matmul %67, %11, %cst_30 {dimension_numbers = #tpu.dot_dimension_numbers<[1], [0], [0], [1], [0, 0, 1, 1], [], []>} : vector<1x32xf32>, vector<32x128xf32>, vector<1x128xf32> -> vector<1x128xf32>
    %70 = arith.addf %68, %69 : vector<1x128xf32>
    %71 = math.tanh %70 : vector<1x128xf32>
    %72 = vector.extract_strided_slice %71 {offsets = [0, 0], sizes = [1, 32], strides = [1, 1]} : vector<1x128xf32> to vector<1x32xf32>
    %cst_31 = arith.constant 5.000000e-01 : f32
    %73 = vector.broadcast %cst_31 : f32 to vector<1x32xf32>
    %74 = arith.mulf %73, %72 : vector<1x32xf32>
    %cst_32 = arith.constant 5.000000e-01 : f32
    %75 = vector.broadcast %cst_32 : f32 to vector<1x32xf32>
    %76 = arith.addf %74, %75 : vector<1x32xf32>
    %77 = vector.extract_strided_slice %71 {offsets = [0, 32], sizes = [1, 32], strides = [1, 1]} : vector<1x128xf32> to vector<1x32xf32>
    %cst_33 = arith.constant 5.000000e-01 : f32
    %78 = vector.broadcast %cst_33 : f32 to vector<1x32xf32>
    %79 = arith.mulf %78, %77 : vector<1x32xf32>
    %cst_34 = arith.constant 5.000000e-01 : f32
    %80 = vector.broadcast %cst_34 : f32 to vector<1x32xf32>
    %81 = arith.addf %79, %80 : vector<1x32xf32>
    %82 = vector.extract_strided_slice %71 {offsets = [0, 64], sizes = [1, 32], strides = [1, 1]} : vector<1x128xf32> to vector<1x32xf32>
    %83 = vector.extract_strided_slice %71 {offsets = [0, 96], sizes = [1, 32], strides = [1, 1]} : vector<1x128xf32> to vector<1x32xf32>
    %cst_35 = arith.constant 5.000000e-01 : f32
    %84 = vector.broadcast %cst_35 : f32 to vector<1x32xf32>
    %85 = arith.mulf %84, %83 : vector<1x32xf32>
    %cst_36 = arith.constant 5.000000e-01 : f32
    %86 = vector.broadcast %cst_36 : f32 to vector<1x32xf32>
    %87 = arith.addf %85, %86 : vector<1x32xf32>
    %88 = arith.mulf %81, %65 : vector<1x32xf32>
    %89 = arith.mulf %76, %82 : vector<1x32xf32>
    %90 = arith.addf %88, %89 : vector<1x32xf32>
    %91 = math.tanh %90 : vector<1x32xf32>
    %92 = arith.mulf %87, %91 : vector<1x32xf32>
    %93 = vector.extract_strided_slice %17 {offsets = [3, 0], sizes = [1, 128], strides = [1, 1]} : vector<8x128xf32> to vector<1x128xf32>
    %cst_37 = arith.constant dense<0.000000e+00> : vector<1x128xf32>
    %94 = tpu.matmul %92, %11, %cst_37 {dimension_numbers = #tpu.dot_dimension_numbers<[1], [0], [0], [1], [0, 0, 1, 1], [], []>} : vector<1x32xf32>, vector<32x128xf32>, vector<1x128xf32> -> vector<1x128xf32>
    %95 = arith.addf %93, %94 : vector<1x128xf32>
    %96 = math.tanh %95 : vector<1x128xf32>
    %97 = vector.extract_strided_slice %96 {offsets = [0, 0], sizes = [1, 32], strides = [1, 1]} : vector<1x128xf32> to vector<1x32xf32>
    %cst_38 = arith.constant 5.000000e-01 : f32
    %98 = vector.broadcast %cst_38 : f32 to vector<1x32xf32>
    %99 = arith.mulf %98, %97 : vector<1x32xf32>
    %cst_39 = arith.constant 5.000000e-01 : f32
    %100 = vector.broadcast %cst_39 : f32 to vector<1x32xf32>
    %101 = arith.addf %99, %100 : vector<1x32xf32>
    %102 = vector.extract_strided_slice %96 {offsets = [0, 32], sizes = [1, 32], strides = [1, 1]} : vector<1x128xf32> to vector<1x32xf32>
    %cst_40 = arith.constant 5.000000e-01 : f32
    %103 = vector.broadcast %cst_40 : f32 to vector<1x32xf32>
    %104 = arith.mulf %103, %102 : vector<1x32xf32>
    %cst_41 = arith.constant 5.000000e-01 : f32
    %105 = vector.broadcast %cst_41 : f32 to vector<1x32xf32>
    %106 = arith.addf %104, %105 : vector<1x32xf32>
    %107 = vector.extract_strided_slice %96 {offsets = [0, 64], sizes = [1, 32], strides = [1, 1]} : vector<1x128xf32> to vector<1x32xf32>
    %108 = vector.extract_strided_slice %96 {offsets = [0, 96], sizes = [1, 32], strides = [1, 1]} : vector<1x128xf32> to vector<1x32xf32>
    %cst_42 = arith.constant 5.000000e-01 : f32
    %109 = vector.broadcast %cst_42 : f32 to vector<1x32xf32>
    %110 = arith.mulf %109, %108 : vector<1x32xf32>
    %cst_43 = arith.constant 5.000000e-01 : f32
    %111 = vector.broadcast %cst_43 : f32 to vector<1x32xf32>
    %112 = arith.addf %110, %111 : vector<1x32xf32>
    %113 = arith.mulf %106, %90 : vector<1x32xf32>
    %114 = arith.mulf %101, %107 : vector<1x32xf32>
    %115 = arith.addf %113, %114 : vector<1x32xf32>
    %116 = math.tanh %115 : vector<1x32xf32>
    %117 = arith.mulf %112, %116 : vector<1x32xf32>
    %118 = vector.extract_strided_slice %17 {offsets = [4, 0], sizes = [1, 128], strides = [1, 1]} : vector<8x128xf32> to vector<1x128xf32>
    %cst_44 = arith.constant dense<0.000000e+00> : vector<1x128xf32>
    %119 = tpu.matmul %117, %11, %cst_44 {dimension_numbers = #tpu.dot_dimension_numbers<[1], [0], [0], [1], [0, 0, 1, 1], [], []>} : vector<1x32xf32>, vector<32x128xf32>, vector<1x128xf32> -> vector<1x128xf32>
    %120 = arith.addf %118, %119 : vector<1x128xf32>
    %121 = math.tanh %120 : vector<1x128xf32>
    %122 = vector.extract_strided_slice %121 {offsets = [0, 0], sizes = [1, 32], strides = [1, 1]} : vector<1x128xf32> to vector<1x32xf32>
    %cst_45 = arith.constant 5.000000e-01 : f32
    %123 = vector.broadcast %cst_45 : f32 to vector<1x32xf32>
    %124 = arith.mulf %123, %122 : vector<1x32xf32>
    %cst_46 = arith.constant 5.000000e-01 : f32
    %125 = vector.broadcast %cst_46 : f32 to vector<1x32xf32>
    %126 = arith.addf %124, %125 : vector<1x32xf32>
    %127 = vector.extract_strided_slice %121 {offsets = [0, 32], sizes = [1, 32], strides = [1, 1]} : vector<1x128xf32> to vector<1x32xf32>
    %cst_47 = arith.constant 5.000000e-01 : f32
    %128 = vector.broadcast %cst_47 : f32 to vector<1x32xf32>
    %129 = arith.mulf %128, %127 : vector<1x32xf32>
    %cst_48 = arith.constant 5.000000e-01 : f32
    %130 = vector.broadcast %cst_48 : f32 to vector<1x32xf32>
    %131 = arith.addf %129, %130 : vector<1x32xf32>
    %132 = vector.extract_strided_slice %121 {offsets = [0, 64], sizes = [1, 32], strides = [1, 1]} : vector<1x128xf32> to vector<1x32xf32>
    %133 = vector.extract_strided_slice %121 {offsets = [0, 96], sizes = [1, 32], strides = [1, 1]} : vector<1x128xf32> to vector<1x32xf32>
    %cst_49 = arith.constant 5.000000e-01 : f32
    %134 = vector.broadcast %cst_49 : f32 to vector<1x32xf32>
    %135 = arith.mulf %134, %133 : vector<1x32xf32>
    %cst_50 = arith.constant 5.000000e-01 : f32
    %136 = vector.broadcast %cst_50 : f32 to vector<1x32xf32>
    %137 = arith.addf %135, %136 : vector<1x32xf32>
    %138 = arith.mulf %131, %115 : vector<1x32xf32>
    %139 = arith.mulf %126, %132 : vector<1x32xf32>
    %140 = arith.addf %138, %139 : vector<1x32xf32>
    %141 = math.tanh %140 : vector<1x32xf32>
    %142 = arith.mulf %137, %141 : vector<1x32xf32>
    %143 = vector.extract_strided_slice %17 {offsets = [5, 0], sizes = [1, 128], strides = [1, 1]} : vector<8x128xf32> to vector<1x128xf32>
    %cst_51 = arith.constant dense<0.000000e+00> : vector<1x128xf32>
    %144 = tpu.matmul %142, %11, %cst_51 {dimension_numbers = #tpu.dot_dimension_numbers<[1], [0], [0], [1], [0, 0, 1, 1], [], []>} : vector<1x32xf32>, vector<32x128xf32>, vector<1x128xf32> -> vector<1x128xf32>
    %145 = arith.addf %143, %144 : vector<1x128xf32>
    %146 = math.tanh %145 : vector<1x128xf32>
    %147 = vector.extract_strided_slice %146 {offsets = [0, 0], sizes = [1, 32], strides = [1, 1]} : vector<1x128xf32> to vector<1x32xf32>
    %cst_52 = arith.constant 5.000000e-01 : f32
    %148 = vector.broadcast %cst_52 : f32 to vector<1x32xf32>
    %149 = arith.mulf %148, %147 : vector<1x32xf32>
    %cst_53 = arith.constant 5.000000e-01 : f32
    %150 = vector.broadcast %cst_53 : f32 to vector<1x32xf32>
    %151 = arith.addf %149, %150 : vector<1x32xf32>
    %152 = vector.extract_strided_slice %146 {offsets = [0, 32], sizes = [1, 32], strides = [1, 1]} : vector<1x128xf32> to vector<1x32xf32>
    %cst_54 = arith.constant 5.000000e-01 : f32
    %153 = vector.broadcast %cst_54 : f32 to vector<1x32xf32>
    %154 = arith.mulf %153, %152 : vector<1x32xf32>
    %cst_55 = arith.constant 5.000000e-01 : f32
    %155 = vector.broadcast %cst_55 : f32 to vector<1x32xf32>
    %156 = arith.addf %154, %155 : vector<1x32xf32>
    %157 = vector.extract_strided_slice %146 {offsets = [0, 64], sizes = [1, 32], strides = [1, 1]} : vector<1x128xf32> to vector<1x32xf32>
    %158 = vector.extract_strided_slice %146 {offsets = [0, 96], sizes = [1, 32], strides = [1, 1]} : vector<1x128xf32> to vector<1x32xf32>
    %cst_56 = arith.constant 5.000000e-01 : f32
    %159 = vector.broadcast %cst_56 : f32 to vector<1x32xf32>
    %160 = arith.mulf %159, %158 : vector<1x32xf32>
    %cst_57 = arith.constant 5.000000e-01 : f32
    %161 = vector.broadcast %cst_57 : f32 to vector<1x32xf32>
    %162 = arith.addf %160, %161 : vector<1x32xf32>
    %163 = arith.mulf %156, %140 : vector<1x32xf32>
    %164 = arith.mulf %151, %157 : vector<1x32xf32>
    %165 = arith.addf %163, %164 : vector<1x32xf32>
    %166 = math.tanh %165 : vector<1x32xf32>
    %167 = arith.mulf %162, %166 : vector<1x32xf32>
    %168 = vector.extract_strided_slice %17 {offsets = [6, 0], sizes = [1, 128], strides = [1, 1]} : vector<8x128xf32> to vector<1x128xf32>
    %cst_58 = arith.constant dense<0.000000e+00> : vector<1x128xf32>
    %169 = tpu.matmul %167, %11, %cst_58 {dimension_numbers = #tpu.dot_dimension_numbers<[1], [0], [0], [1], [0, 0, 1, 1], [], []>} : vector<1x32xf32>, vector<32x128xf32>, vector<1x128xf32> -> vector<1x128xf32>
    %170 = arith.addf %168, %169 : vector<1x128xf32>
    %171 = math.tanh %170 : vector<1x128xf32>
    %172 = vector.extract_strided_slice %171 {offsets = [0, 0], sizes = [1, 32], strides = [1, 1]} : vector<1x128xf32> to vector<1x32xf32>
    %cst_59 = arith.constant 5.000000e-01 : f32
    %173 = vector.broadcast %cst_59 : f32 to vector<1x32xf32>
    %174 = arith.mulf %173, %172 : vector<1x32xf32>
    %cst_60 = arith.constant 5.000000e-01 : f32
    %175 = vector.broadcast %cst_60 : f32 to vector<1x32xf32>
    %176 = arith.addf %174, %175 : vector<1x32xf32>
    %177 = vector.extract_strided_slice %171 {offsets = [0, 32], sizes = [1, 32], strides = [1, 1]} : vector<1x128xf32> to vector<1x32xf32>
    %cst_61 = arith.constant 5.000000e-01 : f32
    %178 = vector.broadcast %cst_61 : f32 to vector<1x32xf32>
    %179 = arith.mulf %178, %177 : vector<1x32xf32>
    %cst_62 = arith.constant 5.000000e-01 : f32
    %180 = vector.broadcast %cst_62 : f32 to vector<1x32xf32>
    %181 = arith.addf %179, %180 : vector<1x32xf32>
    %182 = vector.extract_strided_slice %171 {offsets = [0, 64], sizes = [1, 32], strides = [1, 1]} : vector<1x128xf32> to vector<1x32xf32>
    %183 = vector.extract_strided_slice %171 {offsets = [0, 96], sizes = [1, 32], strides = [1, 1]} : vector<1x128xf32> to vector<1x32xf32>
    %cst_63 = arith.constant 5.000000e-01 : f32
    %184 = vector.broadcast %cst_63 : f32 to vector<1x32xf32>
    %185 = arith.mulf %184, %183 : vector<1x32xf32>
    %cst_64 = arith.constant 5.000000e-01 : f32
    %186 = vector.broadcast %cst_64 : f32 to vector<1x32xf32>
    %187 = arith.addf %185, %186 : vector<1x32xf32>
    %188 = arith.mulf %181, %165 : vector<1x32xf32>
    %189 = arith.mulf %176, %182 : vector<1x32xf32>
    %190 = arith.addf %188, %189 : vector<1x32xf32>
    %191 = math.tanh %190 : vector<1x32xf32>
    %192 = arith.mulf %187, %191 : vector<1x32xf32>
    %193 = vector.extract_strided_slice %17 {offsets = [7, 0], sizes = [1, 128], strides = [1, 1]} : vector<8x128xf32> to vector<1x128xf32>
    %cst_65 = arith.constant dense<0.000000e+00> : vector<1x128xf32>
    %194 = tpu.matmul %192, %11, %cst_65 {dimension_numbers = #tpu.dot_dimension_numbers<[1], [0], [0], [1], [0, 0, 1, 1], [], []>} : vector<1x32xf32>, vector<32x128xf32>, vector<1x128xf32> -> vector<1x128xf32>
    %195 = arith.addf %193, %194 : vector<1x128xf32>
    %196 = math.tanh %195 : vector<1x128xf32>
    %197 = vector.extract_strided_slice %196 {offsets = [0, 0], sizes = [1, 32], strides = [1, 1]} : vector<1x128xf32> to vector<1x32xf32>
    %cst_66 = arith.constant 5.000000e-01 : f32
    %198 = vector.broadcast %cst_66 : f32 to vector<1x32xf32>
    %199 = arith.mulf %198, %197 : vector<1x32xf32>
    %cst_67 = arith.constant 5.000000e-01 : f32
    %200 = vector.broadcast %cst_67 : f32 to vector<1x32xf32>
    %201 = arith.addf %199, %200 : vector<1x32xf32>
    %202 = vector.extract_strided_slice %196 {offsets = [0, 32], sizes = [1, 32], strides = [1, 1]} : vector<1x128xf32> to vector<1x32xf32>
    %cst_68 = arith.constant 5.000000e-01 : f32
    %203 = vector.broadcast %cst_68 : f32 to vector<1x32xf32>
    %204 = arith.mulf %203, %202 : vector<1x32xf32>
    %cst_69 = arith.constant 5.000000e-01 : f32
    %205 = vector.broadcast %cst_69 : f32 to vector<1x32xf32>
    %206 = arith.addf %204, %205 : vector<1x32xf32>
    %207 = vector.extract_strided_slice %196 {offsets = [0, 64], sizes = [1, 32], strides = [1, 1]} : vector<1x128xf32> to vector<1x32xf32>
    %208 = vector.extract_strided_slice %196 {offsets = [0, 96], sizes = [1, 32], strides = [1, 1]} : vector<1x128xf32> to vector<1x32xf32>
    %cst_70 = arith.constant 5.000000e-01 : f32
    %209 = vector.broadcast %cst_70 : f32 to vector<1x32xf32>
    %210 = arith.mulf %209, %208 : vector<1x32xf32>
    %cst_71 = arith.constant 5.000000e-01 : f32
    %211 = vector.broadcast %cst_71 : f32 to vector<1x32xf32>
    %212 = arith.addf %210, %211 : vector<1x32xf32>
    %213 = arith.mulf %206, %190 : vector<1x32xf32>
    %214 = arith.mulf %201, %207 : vector<1x32xf32>
    %215 = arith.addf %213, %214 : vector<1x32xf32>
    %216 = math.tanh %215 : vector<1x32xf32>
    %217 = arith.mulf %212, %216 : vector<1x32xf32>
    %218 = tpu.concatenate %42, %67, %92, %117, %142, %167, %192, %217 in 0 : vector<1x32xf32>, vector<1x32xf32>, vector<1x32xf32>, vector<1x32xf32>, vector<1x32xf32>, vector<1x32xf32>, vector<1x32xf32>, vector<1x32xf32> -> vector<8x32xf32>
    %219 = arith.index_cast %15 : i32 to index
    %c0_72 = arith.constant 0 : index
    %220 = vector.load %arg7[%219, %c0_72] : memref<8x32xf32, #tpu.memory_space<vmem>>, vector<8x32xf32>
    tpu.vector_store %arg7[%219, %c0_72], %218 {strides = array<i32>} : memref<8x32xf32, #tpu.memory_space<vmem>>, vector<8x32xf32>,
    %c1_i32 = arith.constant 1 : i32
    %c0_73 = arith.constant 0 : index
    %c0_74 = arith.constant 0 : index
    %221 = vector.load %arg8[%c0_73, %c0_74] : memref<1x32xf32, #tpu.memory_space<vmem>>, vector<1x32xf32>
    tpu.vector_store %arg8[%c0_73, %c0_74], %217 {strides = array<i32>} : memref<1x32xf32, #tpu.memory_space<vmem>>, vector<1x32xf32>,
    %c0_75 = arith.constant 0 : index
    %c0_76 = arith.constant 0 : index
    %222 = vector.load %arg9[%c0_75, %c0_76] : memref<1x32xf32, #tpu.memory_space<vmem>>, vector<1x32xf32>
    tpu.vector_store %arg9[%c0_75, %c0_76], %215 {strides = array<i32>} : memref<1x32xf32, #tpu.memory_space<vmem>>, vector<1x32xf32>,
    return
  }
  func.func @transform_0(%arg0: i32) -> (i32, i32) {
    %c0_i32 = arith.constant 0 : i32
    %c0_i32_0 = arith.constant 0 : i32
    return %arg0, %c0_i32 : i32, i32
  }
  func.func @transform_1(%arg0: i32) -> (i32, i32) {
    %c0_i32 = arith.constant 0 : i32
    %c0_i32_0 = arith.constant 0 : i32
    %c0_i32_1 = arith.constant 0 : i32
    return %c0_i32, %c0_i32_0 : i32, i32
  }
  func.func @transform_2(%arg0: i32) -> (i32, i32) {
    %c0_i32 = arith.constant 0 : i32
    %c0_i32_0 = arith.constant 0 : i32
    %c0_i32_1 = arith.constant 0 : i32
    return %c0_i32, %c0_i32_0 : i32, i32
  }
  func.func @transform_3(%arg0: i32) -> (i32, i32) {
    %c0_i32 = arith.constant 0 : i32
    %c0_i32_0 = arith.constant 0 : i32
    %c0_i32_1 = arith.constant 0 : i32
    return %c0_i32, %c0_i32_0 : i32, i32
  }
  func.func @transform_4(%arg0: i32) -> (i32, i32) {
    %c0_i32 = arith.constant 0 : i32
    %c0_i32_0 = arith.constant 0 : i32
    %c0_i32_1 = arith.constant 0 : i32
    return %c0_i32, %c0_i32_0 : i32, i32
  }
  func.func @transform_5(%arg0: i32) -> (i32, i32) {
    %c0_i32 = arith.constant 0 : i32
    %c0_i32_0 = arith.constant 0 : i32
    %c0_i32_1 = arith.constant 0 : i32
    return %c0_i32, %c0_i32_0 : i32, i32
  }
  func.func @transform_6(%arg0: i32) -> (i32, i32) {
    %c0_i32 = arith.constant 0 : i32
    %c0_i32_0 = arith.constant 0 : i32
    return %arg0, %c0_i32 : i32, i32
  }
}

</mosaic_0001>

<bundles_post_ra>
// kernel: tpu_custom_call.1
= control target key start
LH: loop header
LB: loop body
LE: loop exit
PB: predicated region body
PF: predicated region fallthrough
CT: control target
= control target key end

     0   :  { %11 = vsyncpa [#allocation6], 0  ;;  %s1510_s0 = inlined_call_operand.hbm [shape: f32[8,16], index: 0, kind: input, shape index: {}]   ;;  %s1511_s1 = inlined_call_operand.hbm [shape: bf16[16,128], index: 1, kind: input, shape index: {}]   ;;  %s1512_s2 = inlined_call_operand.hbm [shape: f32[32,128], index: 2, kind: input, shape index: {}]   ;;  %s1513_s3 = inlined_call_operand.vmem [shape: f32[1,128], index: 3, kind: input, shape index: {}]   ;;  %s1514_s4 = inlined_call_operand.vmem [shape: f32[1,32], index: 4, kind: input, shape index: {}]   ;;  %s1515_s5 = inlined_call_operand.vmem [shape: f32[1,32], index: 5, kind: input, shape index: {}]   ;;  %s1516_s6 = inlined_call_operand.hbm [shape: f32[8,32], index: 6, kind: output, shape index: {}]  }
   0x1   :  { %12 = vsyncpa [#allocation9], 0 }
   0x2   :  { %13 = vsyncpa [#allocation7], 0  ;;  %s1290_s21 = smov [#allocation8]  }
   0x3   :  { %s29_s22 = sshll.u32 %s1290_s21, 4  ;;  %s30_s22 = int_to_ptr.vmem [resolvable:$true] %s29_s22 }
   0x4   :  { %s1212_s23 = scalar_lea.vmem %s30_s22, 128  ;;  %p1217_p1 = scmp.lt.s32.totalorder %s30_s22, %s30_s22 }
   0x5   :  { %p1213_p0 = scmp.ne.s32.totalorder %s30_s22, %s1212_s23  ;;  %p1218_p2 = scmp.lt.s32.totalorder %s1212_s23, %s1212_s23 }
   0x7   :  { %p1219_p3 = por %p1218_p2, %p1217_p1 }
   0x9   :  { %p1220_p4 = pnand %p1219_p3, %p1213_p0 }
   0xb   :  { %1223 = shalt.err (!%p1220_p4)
}
   0xc   :  { %s1291_s24 = smov 64   ;;  %s1292_s25 = smov 4  }
   0xd   :  { %35 = dma.hbm_to_vmem [thread:$0]  %s1511_s1, 128, %s30_s22, [#allocation9], %s1291_s24, %s1291_s24, %s1292_s25  }
   0xe   :  { %s1293_s28 = smov [#allocation5]   ;;  %s1294_s30 = smov [#allocation10]  }
   0xf   :  { %s20_s29 = sshll.u32 %s1293_s28, 4  ;;  %s41_s7 = sshll.u32 %s1294_s30, 4  ;;  %s21_s29 = int_to_ptr.vmem [resolvable:$true] %s20_s29  ;;  %s42_s7 = int_to_ptr.vmem [resolvable:$true] %s41_s7 }
  0x10   :  { %s1232_s8 = scalar_lea.vmem %s21_s29, 128  ;;  %p1237_p6 = scmp.lt.s32.totalorder %s21_s29, %s21_s29 }
  0x11   :  { %p1233_p5 = scmp.ne.s32.totalorder %s21_s29, %s1232_s8  ;;  %p1238_p7 = scmp.lt.s32.totalorder %s1232_s8, %s1232_s8 }
  0x13   :  { %p1239_p8 = por %p1238_p7, %p1237_p6 }
  0x15   :  { %p1240_p9 = pnand %p1239_p8, %p1233_p5 }
  0x17   :  { %1243 = shalt.err (!%p1240_p9)
}
  0x18   :  { %23 = dma.hbm_to_vmem [thread:$0]  %s1510_s0, 128, %s21_s29, [#allocation6]  }
  0x19   :  { %s1252_s11 = scalar_lea.vmem %s42_s7, 512  ;;  %p1257_p11 = scmp.lt.s32.totalorder %s42_s7, %s42_s7 }
  0x1a   :  { %p1253_p10 = scmp.ne.s32.totalorder %s42_s7, %s1252_s11  ;;  %p1258_p12 = scmp.lt.s32.totalorder %s1252_s11, %s1252_s11 }
  0x1c   :  { %p1259_p13 = por %p1258_p12, %p1257_p11 }
  0x1e   :  { %p1260_p0 = pnand %p1259_p13, %p1253_p10 }
  0x20   :  { %1263 = shalt.err (!%p1260_p0)
}
  0x21   :  { %s1295_s1 = smov 128   ;;  %s1296_s12 = smov 8  }
  0x22   :  { %47 = dma.hbm_to_vmem [thread:$0]  %s1512_s2, 512, %s42_s7, [#allocation9], %s1295_s1, %s1295_s1, %s1296_s12  }
  0x23   :  { %1284 = dma.done.wait [#allocation6], 128  }
  0x24   :  { %1285 = vsyncadd [#allocation6], 4294967168 }
  0x25   :  { %1286 = dma.done.wait [#allocation9], 640  }
  0x26   :  { %1287 = vsyncadd [#allocation9], 4294966656  ;;  %v1297_v0 = vmov 0.0   ;;  %vm1298_vm0 = vmmov 0   ;;  %v1354_v1 = vld [vmem:[#allocation10 + $0x18] sm:$0xff]  ;;  %vm69_vm1 = vcmask 253952  }
  0x27   :  { %1071 = vmatprep.subr.mxu1 %v1297_v0  ;;  %1065 = vmatprep.subr.bf16.mxu0 %v1297_v0  ;;  %v1171_v2 = vld [vmem:[#allocation8] sm:$0xff]   ;;  %v1357_v3 = vld [vmem:[#allocation10 + $0x10] sm:$0xff]  ;;  %v1360_v6 = vld [vmem:[#allocation10 + $0x8] sm:$0xff]  ;;  %vm90_vm2 = vcmask 130048   ;;  %vm142_vm3 = vcmask 261120   ;;  %vm965_vm4 = vcmask 1040384  }
  0x28   :  { %1067 = vmatprep.mubr.msk.bf16.mxu0 %vm1298_vm0, %v1297_v0  ;;  %1079 = vmatprep.mubr.msk.f32.mxu1 %vm1298_vm0, %v1297_v0  ;;  %v73_v4 = vld [vmem:[#allocation5] sm:$0xff]  ;;  %v68_v7 = vld [vmem:[%s1514_s4] sm:$0x1]  ;;  %v1368_v8 = vld [vmem:[#allocation10] sm:$0xff]  ;;  %vm967_vm5 = vcmask 1041408   ;;  %vm969_vm6 = vcmask 1042432  }
  0x29   :  { %1072 = vmatpush3.msra.mxu1 %v1354_v1  ;;  %v74_v5 = vpack.c.bf16 %v73_v4, %v73_v4  ;;  %1066 = vmatpush3.bf16.msra.mxu0 %v1171_v2  ;;  %70 = vst.msk [vmem:[#allocation2] sm:$0x1] %vm69_vm1, %v68_v7  ;;  %v71_v10 = vld [vmem:[%s1515_s5] sm:$0x1]  ;;  %s1299_s5 = smov 32   ;;  %vm971_vm7 = vcmask 1043456  }
  0x2a   :  { %1073 = vmatprep.subr.mxu1 %v1297_v0  ;;  %1082 = vmatprep.subr.mxu0 %v1297_v0  ;;  %72 = vst.msk [vmem:[#allocation3] sm:$0x1] %vm69_vm1, %v71_v10  ;;  %v1011_v11 = vld [vmem:[%s1513_s3] ss:$0 sm:$0xff]  ;;  %vm973_vm8 = vcmask 1044480   ;;  %vm975_vm9 = vcmask 1045504  }
  0x2b   :  { %1074 = vmatpush3.msra.mxu1 %v1357_v3  ;;  %vm977_vm10 = vcmask 1046528   ;;  %s1300_s3 = smov 96   ;;  %s1301_s18 = smov [#allocation11]   ;;  %vm988_vm11 = vcmask 261127  }
  0x2c   :  { %1075 = vmatprep.subr.mxu1 %v1297_v0  ;;  %1068 = vmatmul.mubr.msk.bf16.vlgmr.msra.gmra.mxu0 %vm90_vm2, %v74_v5  ;;  %s1001_s19 = sshll.u32 %s1301_s18, 4  ;;  %s1002_s19 = int_to_ptr.vmem [resolvable:$true] %s1001_s19 }
  0x2d   :  { %1076 = vmatpush3.msra.mxu1 %v1360_v6  ;;  %1083 = vmatpush3.msra.mxu0 %v1354_v1  ;;  %s1264_s20 = scalar_lea.vmem %s1002_s19, 128  ;;  %p1269_p2 = scmp.lt.s32.totalorder %s1002_s19, %s1002_s19 }
  0x2e   :  { %1077 = vmatprep.subr.mxu1 %v1297_v0  ;;  %1084 = vmatprep.subr.mxu0 %v1297_v0  ;;  %p1265_p1 = scmp.ne.s32.totalorder %s1002_s19, %s1264_s20  ;;  %p1270_p3 = scmp.lt.s32.totalorder %s1264_s20, %s1264_s20 }
  0x2f   :  { %1078 = vmatpush3.msra.mxu1 %v1368_v8  ;;  %1090 = vmatprep.mubr.msk.f32.mxu0 %vm1298_vm0, %v1297_v0 }
  0x30   :  { %1085 = vmatpush3.msra.mxu0 %v1357_v3  ;;  %1093 = vmatprep.subr.mxu1 %v1297_v0  ;;  %v139_v9 = vld [vmem:[#allocation2] sm:$0x1]  ;;  %p1271_p4 = por %p1270_p3, %p1269_p2 }
  0x31   :  { %1086 = vmatprep.subr.mxu0 %v1297_v0  ;;  %1080 = vmatmul.mubr.msk.f32.vlgmr.msra.gmra.mxu1 %vm142_vm3, %v139_v9  ;;  %v1015_v21 = vld [vmem:[#allocation3] ss:$0 sm:$0xff] }
  0x32   :  { %1087 = vmatpush3.msra.mxu0 %v1360_v6  ;;  %1094 = vmatpush3.msra.mxu1 %v1354_v1  ;;  %p1272_p5 = pnand %p1271_p4, %p1265_p1 }
  0x33   :  { %1088 = vmatprep.subr.mxu0 %v1297_v0  ;;  %1095 = vmatprep.subr.mxu1 %v1297_v0 }
  0x34   :  { %1089 = vmatpush3.msra.mxu0 %v1368_v8  ;;  %1096 = vmatpush3.msra.mxu1 %v1357_v3 }
  0x35   :  { %1101 = vmatprep.mubr.msk.f32.mxu1 %vm1298_vm0, %v1297_v0  ;;  %1097 = vmatprep.subr.mxu1 %v1297_v0 }
  0x36   :  { %1104 = vmatprep.subr.mxu0 %v1297_v0  ;;  %1098 = vmatpush3.msra.mxu1 %v1360_v6 }
  0x37   :  { %1099 = vmatprep.subr.mxu1 %v1297_v0 }
  0x38   :  { %1100 = vmatpush3.msra.mxu1 %v1368_v8 }
  0x39   :  { %1115 = vmatprep.subr.mxu1 %v1297_v0 }
  0xec   :  { %v128_v12 = vpop.f32.mrf.mxu0 }
  0xed   :  { %v1403_v13 = vadd.f32 %v1011_v11, %v128_v12 }
  0xee   :  { %v1069_v14 = vpop.f32.mrf.mxu0 }
  0xf0   :  { %v131_v15 = vpop.f32.mrf.mxu0 }
  0xf1   :  { %v212_v16 = vpop.f32.mrf.mxu1 }
  0xf2   :  { %v216_v17 = vadd.f32 %v212_v16, %v1403_v13  ;;  %v1070_v18 = vpop.f32.mrf.mxu0 }
  0xf3   :  { %v1081_v19 = vpop.f32.mrf.mxu1 }
  0xf4   :  { %1172 = vtanh.f32 %v216_v17 }
 0x101   :  { %v1173_v20 = vpop.eup %1172 }
 0x102   :  { %230 = vrot.lane.b32.xlu0 %v1173_v20, %s1291_s24  ;;  %v218_v22 = vmul.f32 0.5, %v1173_v20 }
 0x104   :  { %v219_v23 = vadd.f32 0.5, %v218_v22 }
 0x106   :  { %225 = vrot.lane.b32.xlu0 %v1015_v21, %s1299_s5 }
 0x174   :  { %v231_v24 = vpop.permute.xlu0 %230 }
 0x175   :  { %v233_v25 = vmul.f32 %v231_v24, %v219_v23 }
 0x177   :  { %235 = vrot.lane.b32.xlu1 %v233_v25, %s1299_s5 }
 0x178   :  { %v226_v26 = vpop.permute.xlu0 %225 }
 0x179   :  { %v228_v27 = vmul.f32 %v226_v26, %v219_v23 }
 0x1e9   :  { %v236_v28 = vpop.permute.xlu1 %235 }
 0x1ea   :  { %v238_v29 = vadd.f32 %v236_v28, %v228_v27 }
 0x1ec   :  { %1174 = vtanh.f32 %v238_v29  ;;  %v328_v43 = vrot.slane %v238_v29, 7 }
 0x1f9   :  { %v1175_v30 = vpop.eup %1174 }
 0x1fa   :  { %241 = vrot.lane.b32.xlu1 %v1175_v30, %s1291_s24 }
 0x26c   :  { %v242_v31 = vpop.permute.xlu1 %241 }
 0x26d   :  { %v1410_v32 = vmul.f32 %v242_v31, %v219_v23 }
 0x26f   :  { %246 = vrot.lane.b32.xlu0 %v1410_v32, %s1299_s5 }
 0x2e1   :  { %v247_v33 = vpop.permute.xlu0 %246 }
 0x2e2   :  { %1091 = vmatmul.mubr.msk.f32.vlgmr.msra.gmra.mxu0 %vm142_vm3, %v247_v33 }
 0x2e3   :  { %1105 = vmatpush3.msra.mxu0 %v1354_v1  ;;  %1112 = vmatprep.mubr.msk.f32.mxu0 %vm1298_vm0, %v1297_v0 }
 0x2e4   :  { %1106 = vmatprep.subr.mxu0 %v1297_v0 }
 0x2e5   :  { %1107 = vmatpush3.msra.mxu0 %v1357_v3 }
 0x2e6   :  { %1108 = vmatprep.subr.mxu0 %v1297_v0 }
 0x2e7   :  { %1109 = vmatpush3.msra.mxu0 %v1360_v6 }
 0x2e8   :  { %1110 = vmatprep.subr.mxu0 %v1297_v0 }
 0x2e9   :  { %1111 = vmatpush3.msra.mxu0 %v1368_v8 }
 0x2ea   :  { %1126 = vmatprep.subr.mxu0 %v1297_v0 }
 0x3a2   :  { %v316_v34 = vpop.f32.mrf.mxu0 }
 0x3a3   :  { %v321_v35 = vrot.slane %v316_v34, 7 }
 0x3a4   :  { %v1092_v36 = vpop.f32.mrf.mxu0 }
 0x3a5   :  { %v323_v37 = vadd.f32 %v321_v35, %v1403_v13 }
 0x3a7   :  { %1176 = vtanh.f32 %v323_v37 }
 0x3b4   :  { %v1177_v38 = vpop.eup %1176 }
 0x3b5   :  { %332 = vrot.lane.b32.xlu1 %v1177_v38, %s1291_s24  ;;  %v325_v39 = vmul.f32 0.5, %v1177_v38 }
 0x3b7   :  { %v326_v40 = vadd.f32 0.5, %v325_v39 }
 0x3b9   :  { %v330_v44 = vmul.f32 %v328_v43, %v326_v40 }
 0x427   :  { %v333_v41 = vpop.permute.xlu1 %332 }
 0x428   :  { %v335_v42 = vmul.f32 %v333_v41, %v326_v40 }
 0x42a   :  { %337 = vrot.lane.b32.xlu0 %v335_v42, %s1299_s5 }
 0x49c   :  { %v338_v45 = vpop.permute.xlu0 %337 }
 0x49d   :  { %v340_v46 = vadd.f32 %v338_v45, %v330_v44 }
 0x49f   :  { %1178 = vtanh.f32 %v340_v46  ;;  %v431_v61 = vrot.slane %v340_v46, 7 }
 0x4ac   :  { %v1179_v47 = vpop.eup %1178 }
 0x4ad   :  { %343 = vrot.lane.b32.xlu1 %v1179_v47, %s1291_s24 }
 0x51f   :  { %v344_v48 = vpop.permute.xlu1 %343 }
 0x520   :  { %v346_v49 = vmul.f32 %v344_v48, %v326_v40 }
 0x522   :  { %v348_v50 = vrot.slane %v346_v49, 1  ;;  %v966_v9 = vsel %vm965_vm4, %v1410_v32, %v346_v49 }
 0x524   :  { %349 = vrot.lane.b32.xlu0 %v348_v50, %s1299_s5 }
 0x596   :  { %v350_v51 = vpop.permute.xlu0 %349 }
 0x597   :  { %1102 = vmatmul.mubr.msk.f32.vlgmr.msra.gmra.mxu1 %vm142_vm3, %v350_v51 }
 0x598   :  { %1116 = vmatpush3.msra.mxu1 %v1354_v1  ;;  %1123 = vmatprep.mubr.msk.f32.mxu1 %vm1298_vm0, %v1297_v0 }
 0x599   :  { %1117 = vmatprep.subr.mxu1 %v1297_v0 }
 0x59a   :  { %1118 = vmatpush3.msra.mxu1 %v1357_v3 }
 0x59b   :  { %1119 = vmatprep.subr.mxu1 %v1297_v0 }
 0x59c   :  { %1120 = vmatpush3.msra.mxu1 %v1360_v6 }
 0x59d   :  { %1121 = vmatprep.subr.mxu1 %v1297_v0 }
 0x59e   :  { %1122 = vmatpush3.msra.mxu1 %v1368_v8 }
 0x59f   :  { %1137 = vmatprep.subr.mxu1 %v1297_v0 }
 0x657   :  { %v419_v52 = vpop.f32.mrf.mxu1 }
 0x658   :  { %v424_v53 = vrot.slane %v419_v52, 6 }
 0x659   :  { %v1103_v54 = vpop.f32.mrf.mxu1 }
 0x65a   :  { %v426_v55 = vadd.f32 %v424_v53, %v1403_v13 }
 0x65c   :  { %1180 = vtanh.f32 %v426_v55 }
 0x669   :  { %v1181_v56 = vpop.eup %1180 }
 0x66a   :  { %435 = vrot.lane.b32.xlu1 %v1181_v56, %s1291_s24  ;;  %v428_v57 = vmul.f32 0.5, %v1181_v56 }
 0x66c   :  { %v429_v58 = vadd.f32 0.5, %v428_v57 }
 0x66e   :  { %v433_v62 = vmul.f32 %v431_v61, %v429_v58 }
 0x6dc   :  { %v436_v59 = vpop.permute.xlu1 %435 }
 0x6dd   :  { %v438_v60 = vmul.f32 %v436_v59, %v429_v58 }
 0x6df   :  { %440 = vrot.lane.b32.xlu0 %v438_v60, %s1299_s5 }
 0x751   :  { %v441_v63 = vpop.permute.xlu0 %440 }
 0x752   :  { %v443_v2 = vadd.f32 %v441_v63, %v433_v62 }
 0x754   :  { %1182 = vtanh.f32 %v443_v2  ;;  %v534_v23 = vrot.slane %v443_v2, 7 }
 0x761   :  { %v1183_v4 = vpop.eup %1182 }
 0x762   :  { %446 = vrot.lane.b32.xlu1 %v1183_v4, %s1291_s24 }
 0x7d4   :  { %v447_v5 = vpop.permute.xlu1 %446 }
 0x7d5   :  { %v449_v7 = vmul.f32 %v447_v5, %v429_v58 }
 0x7d7   :  { %v451_v10 = vrot.slane %v449_v7, 2  ;;  %v968_v11 = vsel %vm967_vm5, %v966_v9, %v449_v7 }
 0x7d9   :  { %452 = vrot.lane.b32.xlu0 %v451_v10, %s1299_s5 }
 0x84b   :  { %v453_v12 = vpop.permute.xlu0 %452 }
 0x84c   :  { %1113 = vmatmul.mubr.msk.f32.vlgmr.msra.gmra.mxu0 %vm142_vm3, %v453_v12 }
 0x84d   :  { %1127 = vmatpush3.msra.mxu0 %v1354_v1  ;;  %1134 = vmatprep.mubr.msk.f32.mxu0 %vm1298_vm0, %v1297_v0 }
 0x84e   :  { %1128 = vmatprep.subr.mxu0 %v1297_v0 }
 0x84f   :  { %1129 = vmatpush3.msra.mxu0 %v1357_v3 }
 0x850   :  { %1130 = vmatprep.subr.mxu0 %v1297_v0 }
 0x851   :  { %1131 = vmatpush3.msra.mxu0 %v1360_v6 }
 0x852   :  { %1132 = vmatprep.subr.mxu0 %v1297_v0 }
 0x853   :  { %1133 = vmatpush3.msra.mxu0 %v1368_v8 }
 0x854   :  { %1148 = vmatprep.subr.mxu0 %v1297_v0 }
 0x90c   :  { %v522_v14 = vpop.f32.mrf.mxu0 }
 0x90d   :  { %v527_v15 = vrot.slane %v522_v14, 5 }
 0x90e   :  { %v1114_v16 = vpop.f32.mrf.mxu0 }
 0x90f   :  { %v529_v17 = vadd.f32 %v527_v15, %v1403_v13 }
 0x911   :  { %1184 = vtanh.f32 %v529_v17 }
 0x91e   :  { %v1185_v18 = vpop.eup %1184 }
 0x91f   :  { %538 = vrot.lane.b32.xlu1 %v1185_v18, %s1291_s24  ;;  %v531_v19 = vmul.f32 0.5, %v1185_v18 }
 0x921   :  { %v532_v20 = vadd.f32 0.5, %v531_v19 }
 0x923   :  { %v536_v24 = vmul.f32 %v534_v23, %v532_v20 }
 0x991   :  { %v539_v21 = vpop.permute.xlu1 %538 }
 0x992   :  { %v541_v22 = vmul.f32 %v539_v21, %v532_v20 }
 0x994   :  { %543 = vrot.lane.b32.xlu0 %v541_v22, %s1299_s5 }
 0xa06   :  { %v544_v25 = vpop.permute.xlu0 %543 }
 0xa07   :  { %v546_v26 = vadd.f32 %v544_v25, %v536_v24 }
 0xa09   :  { %1186 = vtanh.f32 %v546_v26  ;;  %v637_v42 = vrot.slane %v546_v26, 7 }
 0xa16   :  { %v1187_v27 = vpop.eup %1186 }
 0xa17   :  { %549 = vrot.lane.b32.xlu1 %v1187_v27, %s1291_s24 }
 0xa89   :  { %v550_v28 = vpop.permute.xlu1 %549 }
 0xa8a   :  { %v552_v29 = vmul.f32 %v550_v28, %v532_v20 }
 0xa8c   :  { %v554_v30 = vrot.slane %v552_v29, 3  ;;  %v970_v31 = vsel %vm969_vm6, %v968_v11, %v552_v29 }
 0xa8e   :  { %555 = vrot.lane.b32.xlu0 %v554_v30, %s1299_s5 }
 0xb00   :  { %v556_v32 = vpop.permute.xlu0 %555 }
 0xb01   :  { %1124 = vmatmul.mubr.msk.f32.vlgmr.msra.gmra.mxu1 %vm142_vm3, %v556_v32 }
 0xb02   :  { %1138 = vmatpush3.msra.mxu1 %v1354_v1  ;;  %1145 = vmatprep.mubr.msk.f32.mxu1 %vm1298_vm0, %v1297_v0 }
 0xb03   :  { %1139 = vmatprep.subr.mxu1 %v1297_v0 }
 0xb04   :  { %1140 = vmatpush3.msra.mxu1 %v1357_v3 }
 0xb05   :  { %1141 = vmatprep.subr.mxu1 %v1297_v0 }
 0xb06   :  { %1142 = vmatpush3.msra.mxu1 %v1360_v6 }
 0xb07   :  { %1143 = vmatprep.subr.mxu1 %v1297_v0 }
 0xb08   :  { %1144 = vmatpush3.msra.mxu1 %v1368_v8 }
 0xbc1   :  { %v625_v33 = vpop.f32.mrf.mxu1 }
 0xbc2   :  { %v630_v34 = vrot.slane %v625_v33, 4 }
 0xbc3   :  { %v1125_v35 = vpop.f32.mrf.mxu1 }
 0xbc4   :  { %v632_v36 = vadd.f32 %v630_v34, %v1403_v13 }
 0xbc6   :  { %1188 = vtanh.f32 %v632_v36 }
 0xbd3   :  { %v1189_v37 = vpop.eup %1188 }
 0xbd4   :  { %641 = vrot.lane.b32.xlu1 %v1189_v37, %s1291_s24  ;;  %v634_v38 = vmul.f32 0.5, %v1189_v37 }
 0xbd6   :  { %v635_v39 = vadd.f32 0.5, %v634_v38 }
 0xbd8   :  { %v639_v43 = vmul.f32 %v637_v42, %v635_v39 }
 0xc46   :  { %v642_v40 = vpop.permute.xlu1 %641 }
 0xc47   :  { %v644_v41 = vmul.f32 %v642_v40, %v635_v39 }
 0xc49   :  { %646 = vrot.lane.b32.xlu0 %v644_v41, %s1299_s5 }
 0xcbb   :  { %v647_v44 = vpop.permute.xlu0 %646 }
 0xcbc   :  { %v649_v45 = vadd.f32 %v647_v44, %v639_v43 }
 0xcbe   :  { %1190 = vtanh.f32 %v649_v45 }
 0xccb   :  { %v1191_v46 = vpop.eup %1190 }
 0xccc   :  { %652 = vrot.lane.b32.xlu1 %v1191_v46, %s1291_s24 }
 0xd3e   :  { %v653_v47 = vpop.permute.xlu1 %652 }
 0xd3f   :  { %v655_v48 = vmul.f32 %v653_v47, %v635_v39 }
 0xd41   :  { %v657_v49 = vrot.slane %v655_v48, 4  ;;  %v972_v50 = vsel %vm971_vm7, %v970_v31, %v655_v48 }
 0xd43   :  { %658 = vrot.lane.b32.xlu0 %v657_v49, %s1299_s5 }
 0xdb5   :  { %v659_v51 = vpop.permute.xlu0 %658 }
 0xdb6   :  { %1135 = vmatmul.mubr.msk.f32.vlgmr.msra.gmra.mxu0 %vm142_vm3, %v659_v51 }
 0xdb7   :  { %1149 = vmatpush3.msra.mxu0 %v1354_v1  ;;  %1156 = vmatprep.mubr.msk.f32.mxu0 %vm1298_vm0, %v1297_v0 }
 0xdb8   :  { %1150 = vmatprep.subr.mxu0 %v1297_v0 }
 0xdb9   :  { %1151 = vmatpush3.msra.mxu0 %v1357_v3 }
 0xdba   :  { %1152 = vmatprep.subr.mxu0 %v1297_v0 }
 0xdbb   :  { %1153 = vmatpush3.msra.mxu0 %v1360_v6  ;;  %v740_v6 = vrot.slane %v649_v45, 7 }
 0xdbc   :  { %1154 = vmatprep.subr.mxu0 %v1297_v0 }
 0xdbd   :  { %1155 = vmatpush3.msra.mxu0 %v1368_v8 }
 0xe76   :  { %v728_v52 = vpop.f32.mrf.mxu0 }
 0xe77   :  { %v733_v53 = vrot.slane %v728_v52, 3 }
 0xe78   :  { %v1136_v54 = vpop.f32.mrf.mxu0 }
 0xe79   :  { %v735_v1 = vadd.f32 %v733_v53, %v1403_v13 }
 0xe7b   :  { %1192 = vtanh.f32 %v735_v1 }
 0xe88   :  { %v1193_v55 = vpop.eup %1192 }
 0xe89   :  { %744 = vrot.lane.b32.xlu1 %v1193_v55, %s1291_s24  ;;  %v737_v56 = vmul.f32 0.5, %v1193_v55 }
 0xe8b   :  { %v738_v57 = vadd.f32 0.5, %v737_v56 }
 0xe8d   :  { %v742_v59 = vmul.f32 %v740_v6, %v738_v57 }
 0xefb   :  { %v745_v3 = vpop.permute.xlu1 %744 }
 0xefc   :  { %v747_v58 = vmul.f32 %v745_v3, %v738_v57 }
 0xefe   :  { %749 = vrot.lane.b32.xlu0 %v747_v58, %s1299_s5 }
 0xf70   :  { %v750_v0 = vpop.permute.xlu0 %749 }
 0xf71   :  { %v752_v60 = vadd.f32 %v750_v0, %v742_v59 }
 0xf73   :  { %1194 = vtanh.f32 %v752_v60  ;;  %v843_v17 = vrot.slane %v752_v60, 7 }
 0xf80   :  { %v1195_v8 = vpop.eup %1194 }
 0xf81   :  { %755 = vrot.lane.b32.xlu1 %v1195_v8, %s1291_s24 }
 0xff3   :  { %v756_v61 = vpop.permute.xlu1 %755 }
 0xff4   :  { %v758_v62 = vmul.f32 %v756_v61, %v738_v57 }
 0xff6   :  { %v760_v63 = vrot.slane %v758_v62, 5  ;;  %v974_v2 = vsel %vm973_vm8, %v972_v50, %v758_v62 }
 0xff8   :  { %761 = vrot.lane.b32.xlu0 %v760_v63, %s1299_s5 }
0x106a   :  { %v762_v4 = vpop.permute.xlu0 %761 }
0x106b   :  { %1146 = vmatmul.mubr.msk.f32.vlgmr.msra.gmra.mxu1 %vm142_vm3, %v762_v4 }
0x112b   :  { %v831_v5 = vpop.f32.mrf.mxu1 }
0x112c   :  { %v836_v7 = vrot.slane %v831_v5, 2 }
0x112d   :  { %v1147_v9 = vpop.f32.mrf.mxu1 }
0x112e   :  { %v838_v10 = vadd.f32 %v836_v7, %v1403_v13 }
0x1130   :  { %1196 = vtanh.f32 %v838_v10 }
0x113d   :  { %v1197_v11 = vpop.eup %1196 }
0x113e   :  { %847 = vrot.lane.b32.xlu1 %v1197_v11, %s1291_s24  ;;  %v840_v12 = vmul.f32 0.5, %v1197_v11 }
0x1140   :  { %v841_v14 = vadd.f32 0.5, %v840_v12 }
0x1142   :  { %v845_v18 = vmul.f32 %v843_v17, %v841_v14 }
0x11b0   :  { %v848_v15 = vpop.permute.xlu1 %847 }
0x11b1   :  { %v850_v16 = vmul.f32 %v848_v15, %v841_v14 }
0x11b3   :  { %852 = vrot.lane.b32.xlu0 %v850_v16, %s1299_s5 }
0x1225   :  { %v853_v19 = vpop.permute.xlu0 %852 }
0x1226   :  { %v855_v20 = vadd.f32 %v853_v19, %v845_v18 }
0x1228   :  { %1198 = vtanh.f32 %v855_v20  ;;  %v946_v36 = vrot.slane %v855_v20, 7 }
0x1235   :  { %v1199_v21 = vpop.eup %1198 }
0x1236   :  { %858 = vrot.lane.b32.xlu1 %v1199_v21, %s1291_s24 }
0x12a8   :  { %v859_v22 = vpop.permute.xlu1 %858 }
0x12a9   :  { %v861_v23 = vmul.f32 %v859_v22, %v841_v14 }
0x12ab   :  { %v863_v24 = vrot.slane %v861_v23, 6  ;;  %v976_v25 = vsel %vm975_vm9, %v974_v2, %v861_v23 }
0x12ad   :  { %864 = vrot.lane.b32.xlu0 %v863_v24, %s1299_s5 }
0x131f   :  { %v865_v26 = vpop.permute.xlu0 %864 }
0x1320   :  { %1157 = vmatmul.mubr.msk.f32.vlgmr.msra.gmra.mxu0 %vm142_vm3, %v865_v26 }
0x13e0   :  { %v934_v27 = vpop.f32.mrf.mxu0 }
0x13e1   :  { %v939_v28 = vrot.slane %v934_v27, 1 }
0x13e2   :  { %v1158_v29 = vpop.f32.mrf.mxu0 }
0x13e3   :  { %v941_v30 = vadd.f32 %v939_v28, %v1403_v13 }
0x13e5   :  { %1200 = vtanh.f32 %v941_v30 }
0x13f2   :  { %v1201_v31 = vpop.eup %1200 }
0x13f3   :  { %950 = vrot.lane.b32.xlu1 %v1201_v31, %s1291_s24  ;;  %v943_v32 = vmul.f32 0.5, %v1201_v31 }
0x13f5   :  { %v944_v33 = vadd.f32 0.5, %v943_v32 }
0x13f7   :  { %v948_v37 = vmul.f32 %v946_v36, %v944_v33 }
0x1465   :  { %v951_v34 = vpop.permute.xlu1 %950 }
0x1466   :  { %v953_v35 = vmul.f32 %v951_v34, %v944_v33 }
0x1468   :  { %955 = vrot.lane.b32.xlu0 %v953_v35, %s1299_s5 }
0x14da   :  { %v956_v38 = vpop.permute.xlu0 %955 }
0x14db   :  { %v958_v39 = vadd.f32 %v956_v38, %v948_v37 }
0x14dd   :  { %1202 = vtanh.f32 %v958_v39 }
0x14ea   :  { %v1203_v40 = vpop.eup %1202 }
0x14eb   :  { %961 = vrot.lane.b32.xlu1 %v1203_v40, %s1291_s24 }
0x155d   :  { %v962_v41 = vpop.permute.xlu1 %961 }
0x155e   :  { %v964_v13 = vmul.f32 %v962_v41, %v944_v33 }
0x1560   :  { %985 = vrot.lane.b32.xlu1 %v964_v13, %s1299_s5  ;;  %v978_v42 = vsel %vm977_vm10, %v976_v25, %v964_v13 }
0x1561   :  { %980 = vrot.lane.b32.xlu0 %v978_v42, %s1299_s5 }
0x1565   :  { %991 = vrot.lane.b32.xlu0 %v958_v39, %s1300_s3 }
0x15d2   :  { %v986_v43 = vpop.permute.xlu1 %985 }
0x15d3   :  { %989 = vst.msk [vmem:[#allocation2 - $0x7] sm:$0x80] %vm988_vm11, %v986_v43  ;;  %v981_v44 = vpop.permute.xlu0 %980 }
0x15d4   :  { %983 = vst.msk [vmem:[#allocation11] sm:$0xff] %vm142_vm3, %v981_v44 }
0x15d5   :  { %1275 = shalt.err (!%p1272_p5)
}
0x15d6   :  { %1004 = dma.vmem_to_hbm [thread:$0]  %s1002_s19, 128, %s1516_s6, [#allocation7]  }
0x15d7   :  { %v992_v45 = vpop.permute.xlu0 %991 }
0x15d8   :  { %994 = vst.msk [vmem:[#allocation3 - $0x7] sm:$0x80] %vm988_vm11, %v992_v45 }
0x15d9   :  { %1288 = dma.done.wait [#allocation7], 128  }
0x15da   :  { %1289 = vsyncadd [#allocation7], 4294967168 }
0x15db   :  { %1008 = vsyncpa [#allocation6], 1 }
0x15dc   :  { %1009 = vsyncpa [#allocation9], 1 }
0x15dd   :  { %1010 = vsyncpa [#allocation7], 1 }

</bundles_post_ra>
